<compile_context>
chip_gen: v6e
topology: v6e:2x2x1
jax: 0.10.0
libtpu: 0.0.40
codegen_flags: <defaults>
</compile_context>

<pallas_src>
import functools

import numpy as np
import jax
import jax.numpy as jnp
from jax.experimental import pallas as pl
from jax.experimental.pallas import tpu as pltpu


def _round_up(v, m):
    return (v + m - 1) // m * m


# ------------------------------- Pallas kernel -------------------------------

def block_kernel(x_ref, w1_ref, w2_ref, g1_ref, be1_ref, g2_ref, be2_ref,
                 m1_ref, m2_ref, o_ref, *, w0, eps, cnt1, cnt2):
    # x_ref : (Cin_pad,  M0_pad)  f32, C-major input, M0 = N*H0*W0 on lanes
    # w*_ref: (Cout_pad, 9*Cin_pad) matmul dtype (bf16 or f32), tap-major cols
    # g*/be*: (C_pad, 1) f32 BatchNorm gamma / beta
    # m*_ref: (1, M0_pad) f32 validity masks for the two conv outputs
    # o_ref : (Cout_pad, M0_pad) f32 output slab (wrapper strips pad/invalid)
    m0 = x_ref.shape[1]
    cdtype = w1_ref.dtype                     # MXU operand dtype

    def im2col(a):
        # a: (C_pad, M0_pad) f32.  Tap (kh, kw) of a 3x3 VALID conv reads the
        # source at flat lane offset +kh*W0+kw, i.e. a left rotation of the
        # lane axis (XLU vrot, no relayout).  Out-of-window / wrapped columns
        # are garbage but never feed a valid output and are masked from stats.
        parts = []
        for kh in range(3):
            for kw in range(3):
                d = kh * w0 + kw
                parts.append(a if d == 0 else pltpu.roll(a, shift=m0 - d, axis=1))
        # 9 blocks of C_pad (multiple of 8) sublanes -> aligned concat; single
        # cast of the whole patch to the matmul dtype.
        return jnp.concatenate(parts, axis=0).astype(cdtype)

    def bn_relu(h, g_ref, be_ref, mask, cnt):
        # h: (C_pad, M0_pad) f32.  Training-mode BN with batch statistics over
        # the `cnt` valid columns only, computed in ONE pass (E[h], E[h^2]),
        # biased variance, then y = relu(h*scale + shift).
        hm = h * mask
        inv = 1.0 / cnt
        mean = jnp.sum(hm, axis=1, keepdims=True) * inv          # (C_pad, 1)
        ex2 = jnp.sum(hm * h, axis=1, keepdims=True) * inv
        var = ex2 - mean * mean
        scale = g_ref[...] * jax.lax.rsqrt(var + eps)            # EUP rsqrt
        shift = be_ref[...] - mean * scale
        return jnp.maximum(h * scale + shift, 0.0)               # FMA + ReLU

    x = x_ref[...].astype(jnp.float32)
    h1 = jnp.dot(w1_ref[...], im2col(x), preferred_element_type=jnp.float32)
    a1 = bn_relu(h1, g1_ref, be1_ref, m1_ref[...], cnt1)
    h2 = jnp.dot(w2_ref[...], im2col(a1), preferred_element_type=jnp.float32)
    a2 = bn_relu(h2, g2_ref, be2_ref, m2_ref[...], cnt2)
    o_ref[...] = a2.astype(o_ref.dtype)


# --------------------------------- wrapper -----------------------------------

def block_forward(x_nchw, params, *, eps=1e-5, compute_dtype=jnp.bfloat16):
    """Fused (Conv3x3 -> BN -> ReLU) x 2, padding=0 (module default). NCHW I/O.

    compute_dtype is the MXU operand dtype (bf16 on v6e/v7x, f32 for exact
    math); accumulation and all BN/ReLU math stay f32.
    """
    N, Cin, H0, W0 = x_nchw.shape
    w1, w2 = params["w1"], params["w2"]          # (Cmid,Cin,3,3), (Cout,Cmid,3,3)
    Cmid, Cout = w1.shape[0], w2.shape[0]
    H1, W1 = H0 - 2, W0 - 2                      # after conv1 (VALID)
    H2, W2 = H1 - 2, W1 - 2                      # after conv2 (VALID)
    M0 = N * H0 * W0

    Cin_p = _round_up(Cin, 8)
    Cmid_p = _round_up(Cmid, 8)
    Cout_p = _round_up(Cout, 8)
    M0_p = _round_up(M0, 128)                    # lane-dense slab

    # --- layout plumbing (constant-foldable weight repacks + input transpose)
    x_cm = jnp.transpose(x_nchw, (1, 0, 2, 3)).reshape(Cin, M0).astype(jnp.float32)
    x_cm = jnp.pad(x_cm, ((0, Cin_p - Cin), (0, M0_p - M0)))

    def repack_w(w, cin, cin_p, cout, cout_p):
        # (Cout, Cin, 3, 3) -> (Cout_p, 9*Cin_p); column order = tap-major,
        # input-channel-minor, matching im2col row order.  Conv bias is
        # dropped: it cancels exactly under batch-statistics BatchNorm.
        wt = jnp.transpose(w, (0, 2, 3, 1))                       # (Co,3,3,Ci)
        wt = jnp.pad(wt, ((0, cout_p - cout), (0, 0), (0, 0), (0, cin_p - cin)))
        return wt.reshape(cout_p, 9 * cin_p).astype(compute_dtype)

    w1k = repack_w(w1, Cin, Cin_p, Cmid, Cmid_p)
    w2k = repack_w(w2, Cmid, Cmid_p, Cout, Cout_p)

    def pad_param(p, c, c_p, fill):
        return jnp.pad(p.astype(jnp.float32), (0, c_p - c),
                       constant_values=fill).reshape(c_p, 1)

    g1 = pad_param(params["g1"], Cmid, Cmid_p, 1.0)
    be1 = pad_param(params["be1"], Cmid, Cmid_p, 0.0)
    g2 = pad_param(params["g2"], Cout, Cout_p, 1.0)
    be2 = pad_param(params["be2"], Cout, Cout_p, 0.0)

    def valid_mask(h_valid, w_valid):
        m = jnp.arange(M0)
        j = m % W0
        i = (m // W0) % H0
        msk = ((j < w_valid) & (i < h_valid)).astype(jnp.float32).reshape(1, M0)
        return jnp.pad(msk, ((0, 0), (0, M0_p - M0)))

    mask1 = valid_mask(H1, W1)
    mask2 = valid_mask(H2, W2)

    vmem = pl.BlockSpec(memory_space=pltpu.MemorySpace.VMEM)
    kernel = functools.partial(block_kernel, w0=W0, eps=eps,
                               cnt1=float(N * H1 * W1), cnt2=float(N * H2 * W2))
    y = pl.pallas_call(
        kernel,
        out_shape=jax.ShapeDtypeStruct((Cout_p, M0_p), jnp.float32),
        in_specs=[vmem] * 9,
        out_specs=vmem,
    )(x_cm, w1k, w2k, g1, be1, g2, be2, mask1, mask2)

    # Strip channel / lane padding and the invalid (window-overrun) columns,
    # then back to NCHW.  Pure XLA layout plumbing outside the kernel.
    y = y[:Cout, :M0].reshape(Cout, N, H0, W0)[:, :, :H2, :W2]
    return jnp.transpose(y, (1, 0, 2, 3))


# ----------------------------- pure-JAX reference ----------------------------

def block_reference(x, params, eps=1e-5):
    """Faithful reference: VALID conv (with bias) -> training-mode BN -> ReLU, x2."""
    def conv(h, w, b):
        out = jax.lax.conv_general_dilated(
            h, w, window_strides=(1, 1), padding="VALID",
            dimension_numbers=("NCHW", "OIHW", "NCHW"))
        return out + b[None, :, None, None]

    def bnr(h, g, be):
        mean = jnp.mean(h, axis=(0, 2, 3), keepdims=True)
        var = jnp.mean((h - mean) ** 2, axis=(0, 2, 3), keepdims=True)
        y = (h - mean) * jax.lax.rsqrt(var + eps) * g[None, :, None, None] \
            + be[None, :, None, None]
        return jnp.maximum(y, 0.0)

    h = bnr(conv(x, params["w1"], params["b1"]), params["g1"], params["be1"])
    h = bnr(conv(h, params["w2"], params["b2"]), params["g2"], params["be2"])
    return h


# -------------------------------- param init ---------------------------------

def init_params(key, in_channels, out_channels, mid_channels=None):
    if mid_channels is None:
        mid_channels = out_channels
    k1, k2, k3, k4 = jax.random.split(key, 4)

    def xavier(k, cout, cin):
        bound = (6.0 / ((cin + cout) * 9)) ** 0.5
        return jax.random.uniform(k, (cout, cin, 3, 3), jnp.float32, -bound, bound)

    def conv_bias(k, cin, cout):
        b = 1.0 / (cin * 9) ** 0.5
        return jax.random.uniform(k, (cout,), jnp.float32, -b, b)

    return {
        "w1": xavier(k1, mid_channels, in_channels),
        "b1": conv_bias(k2, in_channels, mid_channels),
        "g1": jnp.ones((mid_channels,), jnp.float32),
        "be1": jnp.zeros((mid_channels,), jnp.float32),
        "w2": xavier(k3, out_channels, mid_channels),
        "b2": conv_bias(k4, mid_channels, out_channels),
        "g2": jnp.ones((out_channels,), jnp.float32),
        "be2": jnp.zeros((out_channels,), jnp.float32),
    }


# ----------------------------------- main -------------------------------------

if __name__ == "__main__":
    # Block(in_channels=4, out_channels=8), default mid_channels=out, padding=0.
    # x: (2, 4, 16, 16) -> conv3x3 VALID -> (2, 8, 14, 14) -> conv3x3 VALID
    #   -> (2, 8, 12, 12)
    N, Cin, H, W = 2, 4, 16, 16
    Cout = 8

    key = jax.random.PRNGKey(0)
    kx, kp = jax.random.split(key)
    x = jax.random.normal(kx, (N, Cin, H, W), jnp.float32)
    params = init_params(kp, Cin, Cout)

    ref = jax.block_until_ready(block_reference(x, params))

    # f32 MXU operands: tight check of the fused pipeline's semantics.
    fwd_f32 = jax.jit(functools.partial(block_forward, compute_dtype=jnp.float32))
    out_f32 = jax.block_until_ready(fwd_f32(x, params))
    assert out_f32.shape == (N, Cout, H - 4, W - 4)
    np.testing.assert_allclose(np.asarray(out_f32), np.asarray(ref),
                               rtol=1e-3, atol=1e-3)

    # bf16 MXU operands (v6e/v7x fast path), f32 accumulation + f32 BN math.
    fwd_bf16 = jax.jit(functools.partial(block_forward, compute_dtype=jnp.bfloat16))
    out_bf16 = jax.block_until_ready(fwd_bf16(x, params))
    np.testing.assert_allclose(np.asarray(out_bf16), np.asarray(ref),
                               rtol=6e-2, atol=6e-2)   # bf16-operand tolerance

    print("KERNEL_OK")
</pallas_src>

<mosaic_0001>
module attributes {stable_mosaic.version = 11 : i64} {
  func.func @block_kernel(%arg0: memref<8x512xf32, #tpu.memory_space<vmem>>, %arg1: memref<8x72xf32, #tpu.memory_space<vmem>>, %arg2: memref<8x72xf32, #tpu.memory_space<vmem>>, %arg3: memref<8x1xf32, #tpu.memory_space<vmem>>, %arg4: memref<8x1xf32, #tpu.memory_space<vmem>>, %arg5: memref<8x1xf32, #tpu.memory_space<vmem>>, %arg6: memref<8x1xf32, #tpu.memory_space<vmem>>, %arg7: memref<1x512xf32, #tpu.memory_space<vmem>>, %arg8: memref<1x512xf32, #tpu.memory_space<vmem>>, %arg9: memref<8x512xf32, #tpu.memory_space<vmem>>) attributes {dimension_semantics = [], scalar_prefetch = 0 : i64, scratch_operands = 0 : i64, tpu.core_type = #tpu.core_type<tc>} {
    %c0 = arith.constant 0 : index
    %c0_0 = arith.constant 0 : index
    %0 = vector.load %arg0[%c0, %c0_0] : memref<8x512xf32, #tpu.memory_space<vmem>>, vector<8x512xf32>
    %c0_1 = arith.constant 0 : index
    %c0_2 = arith.constant 0 : index
    %1 = vector.load %arg1[%c0_1, %c0_2] : memref<8x72xf32, #tpu.memory_space<vmem>>, vector<8x72xf32>
    %c511_i32 = arith.constant 511 : i32
    %2 = tpu.dynamic_rotate %0 by %c511_i32 dim 1 : vector<8x512xf32>, i32 -> vector<8x512xf32>
    %c510_i32 = arith.constant 510 : i32
    %3 = tpu.dynamic_rotate %0 by %c510_i32 dim 1 : vector<8x512xf32>, i32 -> vector<8x512xf32>
    %c496_i32 = arith.constant 496 : i32
    %4 = tpu.dynamic_rotate %0 by %c496_i32 dim 1 : vector<8x512xf32>, i32 -> vector<8x512xf32>
    %c495_i32 = arith.constant 495 : i32
    %5 = tpu.dynamic_rotate %0 by %c495_i32 dim 1 : vector<8x512xf32>, i32 -> vector<8x512xf32>
    %c494_i32 = arith.constant 494 : i32
    %6 = tpu.dynamic_rotate %0 by %c494_i32 dim 1 : vector<8x512xf32>, i32 -> vector<8x512xf32>
    %c480_i32 = arith.constant 480 : i32
    %7 = tpu.dynamic_rotate %0 by %c480_i32 dim 1 : vector<8x512xf32>, i32 -> vector<8x512xf32>
    %c479_i32 = arith.constant 479 : i32
    %8 = tpu.dynamic_rotate %0 by %c479_i32 dim 1 : vector<8x512xf32>, i32 -> vector<8x512xf32>
    %c478_i32 = arith.constant 478 : i32
    %9 = tpu.dynamic_rotate %0 by %c478_i32 dim 1 : vector<8x512xf32>, i32 -> vector<8x512xf32>
    %10 = tpu.concatenate %0, %2, %3, %4, %5, %6, %7, %8, %9 in 0 : vector<8x512xf32>, vector<8x512xf32>, vector<8x512xf32>, vector<8x512xf32>, vector<8x512xf32>, vector<8x512xf32>, vector<8x512xf32>, vector<8x512xf32>, vector<8x512xf32> -> vector<72x512xf32>
    %cst = arith.constant dense<0.000000e+00> : vector<8x512xf32>
    %11 = tpu.matmul %1, %10, %cst {dimension_numbers = #tpu.dot_dimension_numbers<[1], [0], [0], [1], [0, 0, 1, 1], [], []>} : vector<8x72xf32>, vector<72x512xf32>, vector<8x512xf32> -> vector<8x512xf32>
    %c0_3 = arith.constant 0 : index
    %c0_4 = arith.constant 0 : index
    %12 = vector.load %arg7[%c0_3, %c0_4] : memref<1x512xf32, #tpu.memory_space<vmem>>, vector<1x512xf32>
    %13 = vector.broadcast %12 : vector<1x512xf32> to vector<8x512xf32>
    %14 = arith.mulf %11, %13 : vector<8x512xf32>
    %cst_5 = arith.constant dense<0.000000e+00> : vector<8xf32>
    %15 = vector.multi_reduction <add>, %14, %cst_5 [1] : vector<8x512xf32> to vector<8xf32>
    %16 = vector.shape_cast %15 : vector<8xf32> to vector<8x1xf32>
    %cst_6 = arith.constant 0.00255102036 : f32
    %17 = vector.broadcast %cst_6 : f32 to vector<8x1xf32>
    %18 = arith.mulf %16, %17 : vector<8x1xf32>
    %19 = arith.mulf %14, %11 : vector<8x512xf32>
    %cst_7 = arith.constant dense<0.000000e+00> : vector<8xf32>
    %20 = vector.multi_reduction <add>, %19, %cst_7 [1] : vector<8x512xf32> to vector<8xf32>
    %21 = vector.shape_cast %20 : vector<8xf32> to vector<8x1xf32>
    %cst_8 = arith.constant 0.00255102036 : f32
    %22 = vector.broadcast %cst_8 : f32 to vector<8x1xf32>
    %23 = arith.mulf %21, %22 : vector<8x1xf32>
    %24 = arith.mulf %18, %18 : vector<8x1xf32>
    %25 = arith.subf %23, %24 : vector<8x1xf32>
    %c0_9 = arith.constant 0 : index
    %c0_10 = arith.constant 0 : index
    %26 = vector.load %arg3[%c0_9, %c0_10] : memref<8x1xf32, #tpu.memory_space<vmem>>, vector<8x1xf32>
    %cst_11 = arith.constant 9.99999974E-6 : f32
    %27 = vector.broadcast %cst_11 : f32 to vector<8x1xf32>
    %28 = arith.addf %25, %27 : vector<8x1xf32>
    %29 = math.rsqrt %28 : vector<8x1xf32>
    %30 = arith.mulf %26, %29 : vector<8x1xf32>
    %c0_12 = arith.constant 0 : index
    %c0_13 = arith.constant 0 : index
    %31 = vector.load %arg4[%c0_12, %c0_13] : memref<8x1xf32, #tpu.memory_space<vmem>>, vector<8x1xf32>
    %32 = arith.mulf %18, %30 : vector<8x1xf32>
    %33 = arith.subf %31, %32 : vector<8x1xf32>
    %34 = vector.broadcast %30 : vector<8x1xf32> to vector<8x512xf32>
    %35 = arith.mulf %11, %34 : vector<8x512xf32>
    %36 = vector.broadcast %33 : vector<8x1xf32> to vector<8x512xf32>
    %37 = arith.addf %35, %36 : vector<8x512xf32>
    %cst_14 = arith.constant 0.000000e+00 : f32
    %38 = vector.broadcast %cst_14 : f32 to vector<8x512xf32>
    %39 = arith.maximumf %37, %38 : vector<8x512xf32>
    %c0_15 = arith.constant 0 : index
    %c0_16 = arith.constant 0 : index
    %40 = vector.load %arg2[%c0_15, %c0_16] : memref<8x72xf32, #tpu.memory_space<vmem>>, vector<8x72xf32>
    %c511_i32_17 = arith.constant 511 : i32
    %41 = tpu.dynamic_rotate %39 by %c511_i32_17 dim 1 : vector<8x512xf32>, i32 -> vector<8x512xf32>
    %c510_i32_18 = arith.constant 510 : i32
    %42 = tpu.dynamic_rotate %39 by %c510_i32_18 dim 1 : vector<8x512xf32>, i32 -> vector<8x512xf32>
    %c496_i32_19 = arith.constant 496 : i32
    %43 = tpu.dynamic_rotate %39 by %c496_i32_19 dim 1 : vector<8x512xf32>, i32 -> vector<8x512xf32>
    %c495_i32_20 = arith.constant 495 : i32
    %44 = tpu.dynamic_rotate %39 by %c495_i32_20 dim 1 : vector<8x512xf32>, i32 -> vector<8x512xf32>
    %c494_i32_21 = arith.constant 494 : i32
    %45 = tpu.dynamic_rotate %39 by %c494_i32_21 dim 1 : vector<8x512xf32>, i32 -> vector<8x512xf32>
    %c480_i32_22 = arith.constant 480 : i32
    %46 = tpu.dynamic_rotate %39 by %c480_i32_22 dim 1 : vector<8x512xf32>, i32 -> vector<8x512xf32>
    %c479_i32_23 = arith.constant 479 : i32
    %47 = tpu.dynamic_rotate %39 by %c479_i32_23 dim 1 : vector<8x512xf32>, i32 -> vector<8x512xf32>
    %c478_i32_24 = arith.constant 478 : i32
    %48 = tpu.dynamic_rotate %39 by %c478_i32_24 dim 1 : vector<8x512xf32>, i32 -> vector<8x512xf32>
    %49 = tpu.concatenate %39, %41, %42, %43, %44, %45, %46, %47, %48 in 0 : vector<8x512xf32>, vector<8x512xf32>, vector<8x512xf32>, vector<8x512xf32>, vector<8x512xf32>, vector<8x512xf32>, vector<8x512xf32>, vector<8x512xf32>, vector<8x512xf32> -> vector<72x512xf32>
    %cst_25 = arith.constant dense<0.000000e+00> : vector<8x512xf32>
    %50 = tpu.matmul %40, %49, %cst_25 {dimension_numbers = #tpu.dot_dimension_numbers<[1], [0], [0], [1], [0, 0, 1, 1], [], []>} : vector<8x72xf32>, vector<72x512xf32>, vector<8x512xf32> -> vector<8x512xf32>
    %c0_26 = arith.constant 0 : index
    %c0_27 = arith.constant 0 : index
    %51 = vector.load %arg8[%c0_26, %c0_27] : memref<1x512xf32, #tpu.memory_space<vmem>>, vector<1x512xf32>
    %52 = vector.broadcast %51 : vector<1x512xf32> to vector<8x512xf32>
    %53 = arith.mulf %50, %52 : vector<8x512xf32>
    %cst_28 = arith.constant dense<0.000000e+00> : vector<8xf32>
    %54 = vector.multi_reduction <add>, %53, %cst_28 [1] : vector<8x512xf32> to vector<8xf32>
    %55 = vector.shape_cast %54 : vector<8xf32> to vector<8x1xf32>
    %cst_29 = arith.constant 0.00347222225 : f32
    %56 = vector.broadcast %cst_29 : f32 to vector<8x1xf32>
    %57 = arith.mulf %55, %56 : vector<8x1xf32>
    %58 = arith.mulf %53, %50 : vector<8x512xf32>
    %cst_30 = arith.constant dense<0.000000e+00> : vector<8xf32>
    %59 = vector.multi_reduction <add>, %58, %cst_30 [1] : vector<8x512xf32> to vector<8xf32>
    %60 = vector.shape_cast %59 : vector<8xf32> to vector<8x1xf32>
    %cst_31 = arith.constant 0.00347222225 : f32
    %61 = vector.broadcast %cst_31 : f32 to vector<8x1xf32>
    %62 = arith.mulf %60, %61 : vector<8x1xf32>
    %63 = arith.mulf %57, %57 : vector<8x1xf32>
    %64 = arith.subf %62, %63 : vector<8x1xf32>
    %c0_32 = arith.constant 0 : index
    %c0_33 = arith.constant 0 : index
    %65 = vector.load %arg5[%c0_32, %c0_33] : memref<8x1xf32, #tpu.memory_space<vmem>>, vector<8x1xf32>
    %cst_34 = arith.constant 9.99999974E-6 : f32
    %66 = vector.broadcast %cst_34 : f32 to vector<8x1xf32>
    %67 = arith.addf %64, %66 : vector<8x1xf32>
    %68 = math.rsqrt %67 : vector<8x1xf32>
    %69 = arith.mulf %65, %68 : vector<8x1xf32>
    %c0_35 = arith.constant 0 : index
    %c0_36 = arith.constant 0 : index
    %70 = vector.load %arg6[%c0_35, %c0_36] : memref<8x1xf32, #tpu.memory_space<vmem>>, vector<8x1xf32>
    %71 = arith.mulf %57, %69 : vector<8x1xf32>
    %72 = arith.subf %70, %71 : vector<8x1xf32>
    %73 = vector.broadcast %69 : vector<8x1xf32> to vector<8x512xf32>
    %74 = arith.mulf %50, %73 : vector<8x512xf32>
    %75 = vector.broadcast %72 : vector<8x1xf32> to vector<8x512xf32>
    %76 = arith.addf %74, %75 : vector<8x512xf32>
    %cst_37 = arith.constant 0.000000e+00 : f32
    %77 = vector.broadcast %cst_37 : f32 to vector<8x512xf32>
    %78 = arith.maximumf %76, %77 : vector<8x512xf32>
    %c0_38 = arith.constant 0 : index
    %c0_39 = arith.constant 0 : index
    %79 = vector.load %arg9[%c0_38, %c0_39] : memref<8x512xf32, #tpu.memory_space<vmem>>, vector<8x512xf32>
    tpu.vector_store %arg9[%c0_38, %c0_39], %78 {strides = array<i32>} : memref<8x512xf32, #tpu.memory_space<vmem>>, vector<8x512xf32>,
    return
  }
}

</mosaic_0001>

<bundles_post_ra>
// kernel: block_forward.1
= control target key start
LH: loop header
LB: loop body
LE: loop exit
PB: predicated region body
PF: predicated region fallthrough
CT: control target
= control target key end

     0   :  { %s705_s13 = smov 94   ;;  %s706_s16 = smov 95   ;;  %v712_v4 = vmov 0.0   ;;  %v45_v5 = vlaneseq  ;;  %vm143_vm8 = vcmask 588800   ;;  %s1135_s0 = inlined_call_operand.vmem [shape: f32[8,512], index: 0, kind: input, shape index: {}]   ;;  %s1136_s1 = inlined_call_operand.vmem [shape: f32[8,72], index: 1, kind: input, shape index: {}]   ;;  %s1137_s7 = inlined_call_operand.vmem [shape: f32[1,512], index: 7, kind: input, shape index: {}]   ;;  %s1138_s3 = inlined_call_operand.vmem [shape: f32[8,1], index: 3, kind: input, shape index: {}]   ;;  %s1139_s4 = inlined_call_operand.vmem [shape: f32[8,1], index: 4, kind: input, shape index: {}]   ;;  %s1140_s2 = inlined_call_operand.vmem [shape: f32[8,72], index: 2, kind: input, shape index: {}]   ;;  %s1141_s8 = inlined_call_operand.vmem [shape: f32[1,512], index: 8, kind: input, shape index: {}]   ;;  %s1142_s5 = inlined_call_operand.vmem [shape: f32[8,1], index: 5, kind: input, shape index: {}]   ;;  %s1143_s6 = inlined_call_operand.vmem [shape: f32[8,1], index: 6, kind: input, shape index: {}]   ;;  %s1144_s9 = inlined_call_operand.vmem [shape: f32[8,512], index: 9, kind: output, shape index: {}]  }
   0x1   :  { %v768_v0 = vld [vmem:[%s1135_s0 + $0x8] sm:$0xff]  ;;  %v773_v1 = vld [vmem:[%s1135_s0] sm:$0xff]  ;;  %v782_v2 = vld [vmem:[%s1135_s0 + $0x10] sm:$0xff]  ;;  %s707_s17 = smov 96   ;;  %s708_s20 = smov 110   ;;  %211 = vmatprep.mubr.f32.mxu0 %v712_v4  ;;  %282 = vmatprep.mubr.f32.mxu1 %v712_v4 }
   0x2   :  { %132 = vrot.lane.b32.xlu0 %v768_v0, %s705_s13  ;;  %130 = vrot.lane.b32.xlu1 %v773_v1, %s705_s13  ;;  %v799_v3 = vld [vmem:[%s1135_s0 + $0x18] sm:$0xff]  ;;  %s709_s0 = smov 111   ;;  %s710_s21 = smov 112   ;;  %v852_v6 = vand.u32 127, %v45_v5 }
   0x3   :  { %s711_s22 = smov 126   ;;  %s713_s23 = smov 127  }
   0x4   :  { %vm138_vm0 = vcmp.lt.s32.totalorder %v852_v6, 94  ;;  %vm125_vm1 = vcmp.lt.s32.totalorder %v852_v6, 95  ;;  %vm112_vm2 = vcmp.lt.s32.totalorder %v852_v6, 96  ;;  %vm99_vm3 = vcmp.lt.s32.totalorder %v852_v6, 110 }
   0x5   :  { %vm86_vm4 = vcmp.lt.s32.totalorder %v852_v6, 111  ;;  %vm73_vm5 = vcmp.lt.s32.totalorder %v852_v6, 112  ;;  %vm60_vm6 = vcmp.lt.s32.totalorder %v852_v6, 126  ;;  %vm47_vm7 = vcmp.lt.s32.totalorder %v852_v6, 127 }
   0x6   :  { %134 = vrot.lane.b32.xlu0 %v782_v2, %s705_s13  ;;  %119 = vrot.lane.b32.xlu1 %v768_v0, %s706_s16 }
   0xa   :  { %121 = vrot.lane.b32.xlu0 %v782_v2, %s706_s16  ;;  %117 = vrot.lane.b32.xlu1 %v773_v1, %s706_s16 }
   0xe   :  { %106 = vrot.lane.b32.xlu0 %v768_v0, %s707_s17  ;;  %108 = vrot.lane.b32.xlu1 %v782_v2, %s707_s17 }
  0x12   :  { %136 = vrot.lane.b32.xlu0 %v799_v3, %s705_s13  ;;  %104 = vrot.lane.b32.xlu1 %v773_v1, %s707_s17 }
  0x16   :  { %93 = vrot.lane.b32.xlu0 %v768_v0, %s708_s20  ;;  %95 = vrot.lane.b32.xlu1 %v782_v2, %s708_s20 }
  0x1a   :  { %123 = vrot.lane.b32.xlu0 %v799_v3, %s706_s16  ;;  %91 = vrot.lane.b32.xlu1 %v773_v1, %s708_s20 }
  0x1e   :  { %80 = vrot.lane.b32.xlu0 %v768_v0, %s709_s0  ;;  %82 = vrot.lane.b32.xlu1 %v782_v2, %s709_s0 }
  0x22   :  { %110 = vrot.lane.b32.xlu0 %v799_v3, %s707_s17  ;;  %78 = vrot.lane.b32.xlu1 %v773_v1, %s709_s0 }
  0x26   :  { %67 = vrot.lane.b32.xlu0 %v768_v0, %s710_s21  ;;  %69 = vrot.lane.b32.xlu1 %v782_v2, %s710_s21 }
  0x2a   :  { %97 = vrot.lane.b32.xlu0 %v799_v3, %s708_s20  ;;  %65 = vrot.lane.b32.xlu1 %v773_v1, %s710_s21 }
  0x2e   :  { %54 = vrot.lane.b32.xlu0 %v768_v0, %s711_s22  ;;  %56 = vrot.lane.b32.xlu1 %v782_v2, %s711_s22 }
  0x32   :  { %84 = vrot.lane.b32.xlu0 %v799_v3, %s709_s0  ;;  %52 = vrot.lane.b32.xlu1 %v773_v1, %s711_s22 }
  0x36   :  { %39 = vrot.lane.b32.xlu0 %v768_v0, %s713_s23  ;;  %41 = vrot.lane.b32.xlu1 %v782_v2, %s713_s23 }
  0x3a   :  { %71 = vrot.lane.b32.xlu0 %v799_v3, %s710_s21  ;;  %37 = vrot.lane.b32.xlu1 %v773_v1, %s713_s23 }
  0x3e   :  { %58 = vrot.lane.b32.xlu0 %v799_v3, %s711_s22  ;;  %43 = vrot.lane.b32.xlu1 %v799_v3, %s713_s23 }
  0x74   :  { %v133_v7 = vpop.permute.xlu0 %132  ;;  %v131_v8 = vpop.permute.xlu1 %130 }
  0x75   :  { %v141_v12 = vsel %vm138_vm0, %v131_v8, %v133_v7 }
  0x78   :  { %v135_v9 = vpop.permute.xlu0 %134  ;;  %v120_v10 = vpop.permute.xlu1 %119 }
  0x79   :  { %v140_v11 = vsel %vm138_vm0, %v133_v7, %v135_v9 }
  0x7a   :  { %161 = vmatprep.subr.mxu0 %v140_v11 }
  0x7b   :  { %162 = vmatpush1.msra.mxu0 %v141_v12 }
  0x7c   :  { %v122_v13 = vpop.permute.xlu0 %121  ;;  %v118_v14 = vpop.permute.xlu1 %117 }
  0x7d   :  { %v127_v15 = vsel %vm125_vm1, %v120_v10, %v122_v13  ;;  %v128_v16 = vsel %vm125_vm1, %v118_v14, %v120_v10 }
  0x7e   :  { %163 = vmatprep.subr.mxu0 %v127_v15  ;;  %v289_v15 = vld [vmem:[%s1137_s7] sm:$0xf] }
  0x7f   :  { %164 = vmatpush1.msra.mxu0 %v128_v16 }
  0x80   :  { %v107_v17 = vpop.permute.xlu0 %106  ;;  %v109_v18 = vpop.permute.xlu1 %108 }
  0x81   :  { %v114_v19 = vsel %vm112_vm2, %v107_v17, %v109_v18 }
  0x82   :  { %165 = vmatprep.subr.mxu0 %v114_v19 }
  0x84   :  { %v137_v20 = vpop.permute.xlu0 %136  ;;  %v105_v21 = vpop.permute.xlu1 %104 }
  0x85   :  { %v115_v22 = vsel %vm112_vm2, %v105_v21, %v107_v17  ;;  %v142_v23 = vsel %vm138_vm0, %v137_v20, %v131_v8  ;;  %v139_v24 = vsel %vm138_vm0, %v135_v9, %v137_v20  ;;  %v36_v8 = vld [vmem:[%s1136_s1] sm:$0xff] }
  0x86   :  { %166 = vmatpush1.msra.mxu0 %v115_v22  ;;  %232 = vmatprep.subr.mxu1 %v142_v23 }
  0x87   :  { %233 = vmatpush1.msra.mxu1 %v139_v24 }
  0x88   :  { %v94_v25 = vpop.permute.xlu0 %93  ;;  %v96_v26 = vpop.permute.xlu1 %95 }
  0x89   :  { %v101_v27 = vsel %vm99_vm3, %v94_v25, %v96_v26 }
  0x8a   :  { %167 = vmatprep.subr.mxu0 %v101_v27 }
  0x8c   :  { %v124_v28 = vpop.permute.xlu0 %123  ;;  %v92_v29 = vpop.permute.xlu1 %91 }
  0x8d   :  { %v102_v30 = vsel %vm99_vm3, %v92_v29, %v94_v25  ;;  %v129_v31 = vsel %vm125_vm1, %v124_v28, %v118_v14  ;;  %v126_v32 = vsel %vm125_vm1, %v122_v13, %v124_v28  ;;  %v938_v13 = vshrl.u32 %v45_v5, 7 }
  0x8e   :  { %168 = vmatpush1.msra.mxu0 %v102_v30  ;;  %234 = vmatprep.subr.mxu1 %v129_v31 }
  0x8f   :  { %235 = vmatpush1.msra.mxu1 %v126_v32  ;;  %v293_v14 = vsub.s32 0, %v938_v13  ;;  %v297_v16 = vsub.s32 1, %v938_v13  ;;  %v305_v19 = vsub.s32 3, %v938_v13 }
  0x90   :  { %v81_v33 = vpop.permute.xlu0 %80  ;;  %v83_v34 = vpop.permute.xlu1 %82 }
  0x91   :  { %v88_v35 = vsel %vm86_vm4, %v81_v33, %v83_v34  ;;  %v306_v24 = vrot.slane %v289_v15, %v305_v19 }
  0x92   :  { %169 = vmatprep.subr.mxu0 %v88_v35 }
  0x94   :  { %v111_v36 = vpop.permute.xlu0 %110  ;;  %v79_v37 = vpop.permute.xlu1 %78 }
  0x95   :  { %v89_v38 = vsel %vm86_vm4, %v79_v37, %v81_v33  ;;  %v116_v39 = vsel %vm112_vm2, %v111_v36, %v105_v21  ;;  %v113_v40 = vsel %vm112_vm2, %v109_v18, %v111_v36 }
  0x96   :  { %170 = vmatpush1.msra.mxu0 %v89_v38  ;;  %236 = vmatprep.subr.mxu1 %v116_v39 }
  0x97   :  { %237 = vmatpush1.msra.mxu1 %v113_v40 }
  0x98   :  { %v68_v41 = vpop.permute.xlu0 %67  ;;  %v70_v42 = vpop.permute.xlu1 %69 }
  0x99   :  { %v75_v43 = vsel %vm73_vm5, %v68_v41, %v70_v42 }
  0x9a   :  { %171 = vmatprep.subr.mxu0 %v75_v43 }
  0x9c   :  { %v98_v44 = vpop.permute.xlu0 %97  ;;  %v66_v45 = vpop.permute.xlu1 %65 }
  0x9d   :  { %v76_v46 = vsel %vm73_vm5, %v66_v45, %v68_v41  ;;  %v103_v47 = vsel %vm99_vm3, %v98_v44, %v92_v29  ;;  %v100_v48 = vsel %vm99_vm3, %v96_v26, %v98_v44 }
  0x9e   :  { %172 = vmatpush1.msra.mxu0 %v76_v46  ;;  %238 = vmatprep.subr.mxu1 %v103_v47 }
  0x9f   :  { %239 = vmatpush1.msra.mxu1 %v100_v48  ;;  %v337_v48 = vld [vmem:[%s1139_s4] sm:$0xff] }
  0xa0   :  { %v55_v49 = vpop.permute.xlu0 %54  ;;  %v57_v50 = vpop.permute.xlu1 %56 }
  0xa1   :  { %v62_v51 = vsel %vm60_vm6, %v55_v49, %v57_v50 }
  0xa2   :  { %173 = vmatprep.subr.mxu0 %v62_v51 }
  0xa4   :  { %v85_v52 = vpop.permute.xlu0 %84  ;;  %v53_v53 = vpop.permute.xlu1 %52 }
  0xa5   :  { %v63_v54 = vsel %vm60_vm6, %v53_v53, %v55_v49  ;;  %v90_v55 = vsel %vm86_vm4, %v85_v52, %v79_v37  ;;  %v87_v56 = vsel %vm86_vm4, %v83_v34, %v85_v52  ;;  %v714_v37 = vmov 0  }
  0xa6   :  { %174 = vmatpush1.msra.mxu0 %v63_v54  ;;  %240 = vmatprep.subr.mxu1 %v90_v55 }
  0xa7   :  { %241 = vmatpush1.msra.mxu1 %v87_v56  ;;  %699 = vset.pattern.permute.xlu0 %v714_v37 }
  0xa8   :  { %v40_v57 = vpop.permute.xlu0 %39  ;;  %v42_v58 = vpop.permute.xlu1 %41  ;;  %700 = vset.pattern.permute.xlu1 %v714_v37 }
  0xa9   :  { %v49_v59 = vsel %vm47_vm7, %v40_v57, %v42_v58 }
  0xaa   :  { %175 = vmatprep.subr.mxu0 %v49_v59 }
  0xac   :  { %v72_v60 = vpop.permute.xlu0 %71  ;;  %v38_v61 = vpop.permute.xlu1 %37 }
  0xad   :  { %v50_v62 = vsel %vm47_vm7, %v38_v61, %v40_v57  ;;  %v77_v63 = vsel %vm73_vm5, %v72_v60, %v66_v45  ;;  %v74_v7 = vsel %vm73_vm5, %v70_v42, %v72_v60  ;;  %v333_v45 = vld [vmem:[%s1138_s3] sm:$0xff] }
  0xae   :  { %176 = vmatpush1.msra.mxu0 %v50_v62  ;;  %242 = vmatprep.subr.mxu1 %v77_v63 }
  0xaf   :  { %177 = vmatprep.subr.mxu0 %v768_v0  ;;  %243 = vmatpush1.msra.mxu1 %v74_v7 }
  0xb0   :  { %v59_v9 = vpop.permute.xlu0 %58  ;;  %178 = vmatpush1.msra.mxu0 %v773_v1  ;;  %v44_v10 = vpop.permute.xlu1 %43 }
  0xb1   :  { %685 = vmatmul.mubr.msk.f32.vlgmr.msra.gmra.mxu0 %vm143_vm8, %v36_v8  ;;  %v64_v11 = vsel %vm60_vm6, %v59_v9, %v53_v53  ;;  %v61_v12 = vsel %vm60_vm6, %v57_v50, %v59_v9  ;;  %v51_v0 = vsel %vm47_vm7, %v44_v10, %v38_v61  ;;  %v48_v1 = vsel %vm47_vm7, %v42_v58, %v44_v10 }
  0xb2   :  { %244 = vmatprep.subr.mxu1 %v64_v11  ;;  %526 = vmatprep.mubr.f32.mxu0 %v712_v4 }
  0xb3   :  { %245 = vmatpush1.msra.mxu1 %v61_v12 }
  0xb4   :  { %246 = vmatprep.subr.mxu1 %v51_v0 }
  0xb5   :  { %247 = vmatpush1.msra.mxu1 %v48_v1 }
  0xb6   :  { %248 = vmatprep.subr.mxu1 %v799_v3  ;;  %v294_v3 = vrot.slane %v289_v15, %v293_v14 }
  0xb7   :  { %249 = vmatpush1.msra.mxu1 %v782_v2  ;;  %v298_v2 = vrot.slane %v289_v15, %v297_v16 }
  0xb8   :  { %686 = vmatmul.mubr.msk.f32.vlgmr.msra.gmra.mxu1 %vm143_vm8, %v36_v8 }
  0xb9   :  { %597 = vmatprep.mubr.f32.mxu1 %v712_v4  ;;  %v301_v4 = vsub.s32 2, %v938_v13 }
  0xbb   :  { %v302_v21 = vrot.slane %v289_v15, %v301_v4 }
 0x171   :  { %v213_v17 = vpop.f32.mrf.mxu0 }
 0x172   :  { %v311_v18 = vmul.f32 %v294_v3, %v213_v17 }
 0x173   :  { %v215_v5 = vpop.f32.mrf.mxu0 }
 0x174   :  { %v312_v20 = vmul.f32 %v298_v2, %v215_v5  ;;  %v321_v22 = vmul.f32 %v311_v18, %v213_v17 }
 0x176   :  { %v322_v23 = vmul.f32 %v312_v20, %v215_v5  ;;  %v315_v27 = vadd.f32 %v312_v20, %v311_v18 }
 0x178   :  { %v284_v25 = vpop.f32.mrf.mxu1  ;;  %v325_v32 = vadd.f32 %v322_v23, %v321_v22 }
 0x179   :  { %v313_v26 = vmul.f32 %v302_v21, %v284_v25 }
 0x17a   :  { %v286_v28 = vpop.f32.mrf.mxu1 }
 0x17b   :  { %v323_v29 = vmul.f32 %v313_v26, %v284_v25  ;;  %v314_v30 = vmul.f32 %v306_v24, %v286_v28  ;;  %v316_v31 = vadd.f32 %v315_v27, %v313_v26 }
 0x17d   :  { %v317_v33 = vadd.f32 %v316_v31, %v314_v30  ;;  %v324_v34 = vmul.f32 %v314_v30, %v286_v28  ;;  %v326_v35 = vadd.f32 %v325_v32, %v323_v29 }
 0x17f   :  { %318 = vadd.xlane.f32.xlu0 %v317_v33  ;;  %v327_v36 = vadd.f32 %v326_v35, %v324_v34 }
 0x181   :  { %328 = vadd.xlane.f32.xlu1 %v327_v36 }
 0x208   :  { %v319_v38 = vpop.xlane.xlu0 %318 }
 0x209   :  { %v320_v39 = vmul.f32 0.0025510204, %v319_v38 }
 0x20a   :  { %v329_v40 = vpop.xlane.xlu1 %328 }
 0x20b   :  { %v331_v41 = vmul.f32 %v320_v39, %v320_v39  ;;  %v330_v42 = vmul.f32 0.0025510204, %v329_v40 }
 0x20d   :  { %v332_v43 = vsub.f32 %v330_v42, %v331_v41 }
 0x20f   :  { %v334_v44 = vadd.f32 1e-05, %v332_v43 }
 0x211   :  { %701 = vrsqrt.f32 %v334_v44 }
 0x21e   :  { %v702_v46 = vpop.eup %701 }
 0x21f   :  { %v336_v47 = vmul.f32 %v702_v46, %v333_v45 }
 0x221   :  { %342 = vperm.xlu0 %699, %v336_v47   ;;  %v338_v49 = vmul.f32 %v336_v47, %v320_v39 }
 0x223   :  { %v339_v50 = vsub.f32 %v337_v48, %v338_v49 }
 0x225   :  { %351 = vperm.xlu1 %700, %v339_v50  }
 0x29c   :  { %v343_v51 = vpop.permute.xlu0 %342 }
 0x29d   :  { %v346_v52 = vmul.f32 %v343_v51, %v215_v5  ;;  %v347_v54 = vmul.f32 %v343_v51, %v284_v25  ;;  %v348_v55 = vmul.f32 %v343_v51, %v286_v28  ;;  %v345_v60 = vmul.f32 %v343_v51, %v213_v17 }
 0x2a0   :  { %v352_v53 = vpop.permute.xlu1 %351 }
 0x2a1   :  { %v355_v56 = vadd.f32 %v352_v53, %v346_v52  ;;  %v356_v57 = vadd.f32 %v352_v53, %v347_v54  ;;  %v357_v58 = vadd.f32 %v352_v53, %v348_v55  ;;  %v354_v61 = vadd.f32 %v352_v53, %v345_v60 }
 0x2a3   :  { %v961_v59 = vmax.f32 %v355_v56, 0.0  ;;  %v967_v62 = vmax.f32 %v356_v57, 0.0  ;;  %v969_v63 = vmax.f32 %v357_v58, 0.0  ;;  %v975_v7 = vmax.f32 %v354_v61, 0.0 }
 0x2a5   :  { %425 = vrot.lane.b32.xlu0 %v961_v59, %s707_s17  ;;  %449 = vrot.lane.b32.xlu1 %v961_v59, %s705_s13 }
 0x2a9   :  { %453 = vrot.lane.b32.xlu0 %v969_v63, %s705_s13  ;;  %451 = vrot.lane.b32.xlu1 %v967_v62, %s705_s13 }
 0x2ad   :  { %413 = vrot.lane.b32.xlu0 %v961_v59, %s708_s20  ;;  %447 = vrot.lane.b32.xlu1 %v975_v7, %s705_s13 }
 0x2b1   :  { %441 = vrot.lane.b32.xlu0 %v969_v63, %s706_s16  ;;  %437 = vrot.lane.b32.xlu1 %v961_v59, %s706_s16 }
 0x2b5   :  { %401 = vrot.lane.b32.xlu0 %v961_v59, %s709_s0  ;;  %439 = vrot.lane.b32.xlu1 %v967_v62, %s706_s16 }
 0x2b9   :  { %429 = vrot.lane.b32.xlu0 %v969_v63, %s707_s17  ;;  %435 = vrot.lane.b32.xlu1 %v975_v7, %s706_s16 }
 0x2bd   :  { %389 = vrot.lane.b32.xlu0 %v961_v59, %s710_s21  ;;  %427 = vrot.lane.b32.xlu1 %v967_v62, %s707_s17 }
 0x2c1   :  { %417 = vrot.lane.b32.xlu0 %v969_v63, %s708_s20  ;;  %423 = vrot.lane.b32.xlu1 %v975_v7, %s707_s17 }
 0x2c5   :  { %377 = vrot.lane.b32.xlu0 %v961_v59, %s711_s22  ;;  %415 = vrot.lane.b32.xlu1 %v967_v62, %s708_s20 }
 0x2c9   :  { %405 = vrot.lane.b32.xlu0 %v969_v63, %s709_s0  ;;  %411 = vrot.lane.b32.xlu1 %v975_v7, %s708_s20 }
 0x2cd   :  { %365 = vrot.lane.b32.xlu0 %v961_v59, %s713_s23  ;;  %403 = vrot.lane.b32.xlu1 %v967_v62, %s709_s0 }
 0x2d1   :  { %393 = vrot.lane.b32.xlu0 %v969_v63, %s710_s21  ;;  %399 = vrot.lane.b32.xlu1 %v975_v7, %s709_s0 }
 0x2d5   :  { %381 = vrot.lane.b32.xlu0 %v969_v63, %s711_s22  ;;  %391 = vrot.lane.b32.xlu1 %v967_v62, %s710_s21 }
 0x2d9   :  { %387 = vrot.lane.b32.xlu1 %v975_v7, %s710_s21 }
 0x2dd   :  { %379 = vrot.lane.b32.xlu1 %v967_v62, %s711_s22 }
 0x2e1   :  { %375 = vrot.lane.b32.xlu1 %v975_v7, %s711_s22 }
 0x2e5   :  { %367 = vrot.lane.b32.xlu1 %v967_v62, %s713_s23 }
 0x2e9   :  { %363 = vrot.lane.b32.xlu1 %v975_v7, %s713_s23 }
 0x2ed   :  { %369 = vrot.lane.b32.xlu1 %v969_v63, %s713_s23 }
 0x317   :  { %v426_v8 = vpop.permute.xlu0 %425  ;;  %v450_v9 = vpop.permute.xlu1 %449 }
 0x31b   :  { %v454_v10 = vpop.permute.xlu0 %453  ;;  %v452_v11 = vpop.permute.xlu1 %451 }
 0x31c   :  { %v456_v12 = vsel %vm138_vm0, %v450_v9, %v452_v11  ;;  %v455_v2 = vsel %vm138_vm0, %v452_v11, %v454_v10 }
 0x31d   :  { %476 = vmatprep.subr.mxu0 %v456_v12 }
 0x31f   :  { %v414_v0 = vpop.permute.xlu0 %413  ;;  %v448_v1 = vpop.permute.xlu1 %447 }
 0x320   :  { %v457_v15 = vsel %vm138_vm0, %v448_v1, %v450_v9  ;;  %v458_v3 = vsel %vm138_vm0, %v454_v10, %v448_v1 }
 0x321   :  { %477 = vmatpush1.msra.mxu0 %v457_v15  ;;  %547 = vmatprep.subr.mxu1 %v458_v3  ;;  %v362_v15 = vld [vmem:[%s1140_s2] sm:$0xff] }
 0x322   :  { %548 = vmatpush1.msra.mxu1 %v455_v2 }
 0x323   :  { %v442_v17 = vpop.permute.xlu0 %441  ;;  %v438_v18 = vpop.permute.xlu1 %437 }
 0x327   :  { %v402_v5 = vpop.permute.xlu0 %401  ;;  %v440_v20 = vpop.permute.xlu1 %439 }
 0x328   :  { %v444_v21 = vsel %vm125_vm1, %v438_v18, %v440_v20  ;;  %v443_v26 = vsel %vm125_vm1, %v440_v20, %v442_v17 }
 0x329   :  { %478 = vmatprep.subr.mxu0 %v444_v21 }
 0x32b   :  { %v430_v22 = vpop.permute.xlu0 %429  ;;  %v436_v23 = vpop.permute.xlu1 %435 }
 0x32c   :  { %v445_v24 = vsel %vm125_vm1, %v436_v23, %v438_v18  ;;  %v446_v25 = vsel %vm125_vm1, %v442_v17, %v436_v23 }
 0x32d   :  { %479 = vmatpush1.msra.mxu0 %v445_v24  ;;  %549 = vmatprep.subr.mxu1 %v446_v25 }
 0x32e   :  { %550 = vmatpush1.msra.mxu1 %v443_v26 }
 0x32f   :  { %v390_v27 = vpop.permute.xlu0 %389  ;;  %v428_v28 = vpop.permute.xlu1 %427 }
 0x330   :  { %v432_v29 = vsel %vm112_vm2, %v426_v8, %v428_v28  ;;  %v431_v34 = vsel %vm112_vm2, %v428_v28, %v430_v22 }
 0x331   :  { %480 = vmatprep.subr.mxu0 %v432_v29 }
 0x333   :  { %v418_v30 = vpop.permute.xlu0 %417  ;;  %v424_v31 = vpop.permute.xlu1 %423 }
 0x334   :  { %v433_v32 = vsel %vm112_vm2, %v424_v31, %v426_v8  ;;  %v434_v33 = vsel %vm112_vm2, %v430_v22, %v424_v31 }
 0x335   :  { %481 = vmatpush1.msra.mxu0 %v433_v32  ;;  %551 = vmatprep.subr.mxu1 %v434_v33 }
 0x336   :  { %552 = vmatpush1.msra.mxu1 %v431_v34 }
 0x337   :  { %v416_v35 = vpop.permute.xlu1 %415  ;;  %v378_v37 = vpop.permute.xlu0 %377 }
 0x338   :  { %v420_v36 = vsel %vm99_vm3, %v414_v0, %v416_v35  ;;  %v419_v41 = vsel %vm99_vm3, %v416_v35, %v418_v30 }
 0x339   :  { %482 = vmatprep.subr.mxu0 %v420_v36 }
 0x33b   :  { %v412_v38 = vpop.permute.xlu1 %411  ;;  %v406_v42 = vpop.permute.xlu0 %405 }
 0x33c   :  { %v421_v39 = vsel %vm99_vm3, %v412_v38, %v414_v0  ;;  %v422_v40 = vsel %vm99_vm3, %v418_v30, %v412_v38  ;;  %v648_v38 = vld [vmem:[%s1142_s5] sm:$0xff] }
 0x33d   :  { %483 = vmatpush1.msra.mxu0 %v421_v39  ;;  %553 = vmatprep.subr.mxu1 %v422_v40 }
 0x33e   :  { %554 = vmatpush1.msra.mxu1 %v419_v41  ;;  %v652_v41 = vld [vmem:[%s1143_s6] sm:$0xff] }
 0x33f   :  { %v404_v43 = vpop.permute.xlu1 %403  ;;  %v366_v48 = vpop.permute.xlu0 %365 }
 0x340   :  { %v408_v44 = vsel %vm86_vm4, %v402_v5, %v404_v43  ;;  %v407_v49 = vsel %vm86_vm4, %v404_v43, %v406_v42 }
 0x341   :  { %484 = vmatprep.subr.mxu0 %v408_v44 }
 0x343   :  { %v400_v45 = vpop.permute.xlu1 %399  ;;  %v394_v52 = vpop.permute.xlu0 %393 }
 0x344   :  { %v409_v46 = vsel %vm86_vm4, %v400_v45, %v402_v5  ;;  %v410_v47 = vsel %vm86_vm4, %v406_v42, %v400_v45 }
 0x345   :  { %485 = vmatpush1.msra.mxu0 %v409_v46  ;;  %555 = vmatprep.subr.mxu1 %v410_v47 }
 0x346   :  { %556 = vmatpush1.msra.mxu1 %v407_v49 }
 0x347   :  { %v392_v50 = vpop.permute.xlu1 %391  ;;  %v382_v60 = vpop.permute.xlu0 %381 }
 0x348   :  { %v396_v51 = vsel %vm73_vm5, %v390_v27, %v392_v50  ;;  %v395_v56 = vsel %vm73_vm5, %v392_v50, %v394_v52 }
 0x349   :  { %486 = vmatprep.subr.mxu0 %v396_v51 }
 0x34b   :  { %v388_v53 = vpop.permute.xlu1 %387 }
 0x34c   :  { %v397_v54 = vsel %vm73_vm5, %v388_v53, %v390_v27  ;;  %v398_v55 = vsel %vm73_vm5, %v394_v52, %v388_v53 }
 0x34d   :  { %487 = vmatpush1.msra.mxu0 %v397_v54  ;;  %557 = vmatprep.subr.mxu1 %v398_v55 }
 0x34e   :  { %558 = vmatpush1.msra.mxu1 %v395_v56 }
 0x34f   :  { %v380_v57 = vpop.permute.xlu1 %379 }
 0x350   :  { %v384_v58 = vsel %vm60_vm6, %v378_v37, %v380_v57  ;;  %v383_v10 = vsel %vm60_vm6, %v380_v57, %v382_v60 }
 0x351   :  { %488 = vmatprep.subr.mxu0 %v384_v58 }
 0x353   :  { %v376_v61 = vpop.permute.xlu1 %375 }
 0x354   :  { %v385_v8 = vsel %vm60_vm6, %v376_v61, %v378_v37  ;;  %v386_v9 = vsel %vm60_vm6, %v382_v60, %v376_v61 }
 0x355   :  { %489 = vmatpush1.msra.mxu0 %v385_v8  ;;  %559 = vmatprep.subr.mxu1 %v386_v9 }
 0x356   :  { %560 = vmatpush1.msra.mxu1 %v383_v10 }
 0x357   :  { %v368_v11 = vpop.permute.xlu1 %367 }
 0x358   :  { %v372_v12 = vsel %vm47_vm7, %v366_v48, %v368_v11 }
 0x359   :  { %490 = vmatprep.subr.mxu0 %v372_v12 }
 0x35b   :  { %v364_v0 = vpop.permute.xlu1 %363 }
 0x35c   :  { %v373_v1 = vsel %vm47_vm7, %v364_v0, %v366_v48 }
 0x35d   :  { %491 = vmatpush1.msra.mxu0 %v373_v1 }
 0x35e   :  { %492 = vmatprep.subr.mxu0 %v961_v59  ;;  %v604_v59 = vld [vmem:[%s1141_s8] sm:$0xf] }
 0x35f   :  { %493 = vmatpush1.msra.mxu0 %v975_v7  ;;  %v370_v3 = vpop.permute.xlu1 %369  ;;  %v609_v7 = vrot.slane %v604_v59, %v293_v14  ;;  %v613_v18 = vrot.slane %v604_v59, %v297_v16 }
 0x360   :  { %v371_v2 = vsel %vm47_vm7, %v368_v11, %v370_v3  ;;  %687 = vmatmul.mubr.msk.f32.vlgmr.msra.gmra.mxu0 %vm143_vm8, %v362_v15  ;;  %v374_v17 = vsel %vm47_vm7, %v370_v3, %v364_v0 }
 0x361   :  { %561 = vmatprep.subr.mxu1 %v374_v17 }
 0x362   :  { %562 = vmatpush1.msra.mxu1 %v371_v2 }
 0x363   :  { %563 = vmatprep.subr.mxu1 %v969_v63  ;;  %v617_v63 = vrot.slane %v604_v59, %v301_v4 }
 0x364   :  { %564 = vmatpush1.msra.mxu1 %v967_v62  ;;  %v621_v62 = vrot.slane %v604_v59, %v305_v19 }
 0x365   :  { %688 = vmatmul.mubr.msk.f32.vlgmr.msra.gmra.mxu1 %vm143_vm8, %v362_v15 }
 0x420   :  { %v528_v6 = vpop.f32.mrf.mxu0 }
 0x421   :  { %v626_v5 = vmul.f32 %v609_v7, %v528_v6 }
 0x422   :  { %v530_v20 = vpop.f32.mrf.mxu0 }
 0x423   :  { %v627_v21 = vmul.f32 %v613_v18, %v530_v20  ;;  %v636_v22 = vmul.f32 %v626_v5, %v528_v6 }
 0x425   :  { %v630_v23 = vadd.f32 %v627_v21, %v626_v5  ;;  %v637_v24 = vmul.f32 %v627_v21, %v530_v20  ;;  %v599_v25 = vpop.f32.mrf.mxu1 }
 0x426   :  { %v628_v26 = vmul.f32 %v617_v63, %v599_v25 }
 0x427   :  { %v640_v27 = vadd.f32 %v637_v24, %v636_v22  ;;  %v601_v14 = vpop.f32.mrf.mxu1 }
 0x428   :  { %v638_v28 = vmul.f32 %v628_v26, %v599_v25  ;;  %v629_v29 = vmul.f32 %v621_v62, %v601_v14  ;;  %v631_v16 = vadd.f32 %v630_v23, %v628_v26 }
 0x42a   :  { %v639_v30 = vmul.f32 %v629_v29, %v601_v14  ;;  %v632_v31 = vadd.f32 %v631_v16, %v629_v29  ;;  %v641_v32 = vadd.f32 %v640_v27, %v638_v28 }
 0x42c   :  { %633 = vadd.xlane.f32.xlu0 %v632_v31  ;;  %v642_v33 = vadd.f32 %v641_v32, %v639_v30 }
 0x42e   :  { %643 = vadd.xlane.f32.xlu1 %v642_v33 }
 0x4b5   :  { %v634_v4 = vpop.xlane.xlu0 %633 }
 0x4b6   :  { %v635_v34 = vmul.f32 0.0034722222, %v634_v4 }
 0x4b7   :  { %v644_v13 = vpop.xlane.xlu1 %643 }
 0x4b8   :  { %v646_v19 = vmul.f32 %v635_v34, %v635_v34  ;;  %v645_v35 = vmul.f32 0.0034722222, %v644_v13 }
 0x4ba   :  { %v647_v36 = vsub.f32 %v645_v35, %v646_v19 }
 0x4bc   :  { %v649_v37 = vadd.f32 1e-05, %v647_v36 }
 0x4be   :  { %703 = vrsqrt.f32 %v649_v37 }
 0x4cb   :  { %v704_v39 = vpop.eup %703 }
 0x4cc   :  { %v651_v40 = vmul.f32 %v704_v39, %v648_v38 }
 0x4ce   :  { %657 = vperm.xlu0 %699, %v651_v40   ;;  %v653_v42 = vmul.f32 %v651_v40, %v635_v34 }
 0x4d0   :  { %v654_v43 = vsub.f32 %v652_v41, %v653_v42 }
 0x4d2   :  { %666 = vperm.xlu1 %700, %v654_v43  }
 0x549   :  { %v658_v44 = vpop.permute.xlu0 %657 }
 0x54a   :  { %v660_v45 = vmul.f32 %v658_v44, %v528_v6  ;;  %v661_v46 = vmul.f32 %v658_v44, %v530_v20  ;;  %v662_v47 = vmul.f32 %v658_v44, %v599_v25  ;;  %v663_v48 = vmul.f32 %v658_v44, %v601_v14 }
 0x54d   :  { %v667_v49 = vpop.permute.xlu1 %666 }
 0x54e   :  { %v669_v50 = vadd.f32 %v667_v49, %v660_v45  ;;  %v670_v51 = vadd.f32 %v667_v49, %v661_v46  ;;  %v671_v52 = vadd.f32 %v667_v49, %v662_v47  ;;  %v672_v53 = vadd.f32 %v667_v49, %v663_v48 }
 0x550   :  { %v673_v54 = vmax.f32 %v669_v50, 0.0  ;;  %v674_v55 = vmax.f32 %v670_v51, 0.0  ;;  %v675_v56 = vmax.f32 %v671_v52, 0.0  ;;  %v676_v57 = vmax.f32 %v672_v53, 0.0 }
 0x552   :  { %677 = vst [vmem:[%s1144_s9] sm:$0xff] %v673_v54  ;;  %678 = vst [vmem:[%s1144_s9 + $0x8] sm:$0xff] %v674_v55 }
 0x553   :  { %679 = vst [vmem:[%s1144_s9 + $0x10] sm:$0xff] %v675_v56  ;;  %680 = vst [vmem:[%s1144_s9 + $0x18] sm:$0xff] %v676_v57 }

</bundles_post_ra>
